<compile_context>
chip_gen: v5e
topology: v5e:2x2
jax: 0.10.0
libtpu: 0.0.40
codegen_flags: <defaults>
</compile_context>

<pallas_src>
import math

import jax
import jax.numpy as jnp
from jax.experimental import pallas as pl
from jax.experimental.pallas import tpu as pltpu


# ---------------------------------------------------------------------------
# Kernels
# ---------------------------------------------------------------------------
def _mm_add_small_kernel(x1_ref, x2_ref, inp_ref, out_ref):
    # Whole problem in one VMEM block: add (VPU), matmul (MXU), add (VPU).
    b = x2_ref[...] + inp_ref[...]
    v1 = jnp.dot(x1_ref[...], b, preferred_element_type=jnp.float32)
    out_ref[...] = (v1 + inp_ref[...]).astype(out_ref.dtype)


def _mm_add_tiled_kernel(x1_ref, b_ref, inp_ref, out_ref):
    # grid = (M//tm, N//tn, K//tk); K (reduction) is the last, "arbitrary" axis.
    # out_ref's block index is (i, j) for every k, so it stays resident in
    # VMEM across the K loop and serves directly as the f32 accumulator.
    k = pl.program_id(2)

    @pl.when(k == 0)
    def _():
        out_ref[...] = inp_ref[...]  # fold the post-matmul '+ inp' into init

    out_ref[...] += jnp.dot(
        x1_ref[...], b_ref[...], preferred_element_type=jnp.float32
    )


# ---------------------------------------------------------------------------
# Wrappers
# ---------------------------------------------------------------------------
def _round_up(x, m):
    return (x + m - 1) // m * m


def _small_call(x1, x2, inp):
    n = x1.shape[0]
    spec = pl.BlockSpec((n, n), lambda: (0, 0))
    return pl.pallas_call(
        _mm_add_small_kernel,
        out_shape=jax.ShapeDtypeStruct((n, n), jnp.float32),
        in_specs=[spec, spec, spec],
        out_specs=spec,
        compiler_params=pltpu.CompilerParams(
            vmem_limit_bytes=48 * 1024 * 1024,
        ),
    )(x1, x2, inp)


def _tiled_call(x1, b, inp, tm, tn, tk):
    n = x1.shape[0]
    # Pad every (square) operand to one common side so tm | M, tn | N, tk | K.
    # With equal tile sizes lcm == tile, so padding waste is at most one tile.
    pad = _round_up(n, math.lcm(tm, tn, tk))

    def _pad(a):
        if a.shape[0] == pad:
            return a
        return jnp.pad(a, ((0, pad - a.shape[0]), (0, pad - a.shape[1])))

    x1_p, b_p, inp_p = _pad(x1), _pad(b), _pad(inp)

    # Advisory cost hint for the XLA scheduler around the custom call.
    cost = pl.CostEstimate(
        flops=2 * pad * pad * pad + pad * pad,
        transcendentals=0,
        bytes_accessed=(
            (pad // tn) * pad * pad * x1_p.dtype.itemsize  # x1 re-read per j tile
            + (pad // tm) * pad * pad * b_p.dtype.itemsize  # b re-read per i tile
            + pad * pad * 4                                 # inp read once
            + pad * pad * 4                                 # out written once
        ),
    )

    out_p = pl.pallas_call(
        _mm_add_tiled_kernel,
        out_shape=jax.ShapeDtypeStruct((pad, pad), jnp.float32),
        grid_spec=pltpu.PrefetchScalarGridSpec(
            num_scalar_prefetch=0,
            grid=(pad // tm, pad // tn, pad // tk),
            in_specs=[
                pl.BlockSpec((tm, tk), lambda i, j, k: (i, k)),  # x1  -> [M, K]
                pl.BlockSpec((tk, tn), lambda i, j, k: (k, j)),  # b   -> [K, N] (x2 + inp, precomputed)
                pl.BlockSpec((tm, tn), lambda i, j, k: (i, j)),  # inp -> [M, N] (accumulator init)
            ],
            out_specs=pl.BlockSpec((tm, tn), lambda i, j, k: (i, j)),
        ),
        compiler_params=pltpu.CompilerParams(
            dimension_semantics=("parallel", "parallel", "arbitrary"),
            vmem_limit_bytes=48 * 1024 * 1024,
        ),
        cost_estimate=cost,
    )(x1_p, b_p, inp_p)

    if pad == n:
        return out_p
    return out_p[:n, :n]


def model_forward(x1, x2, inp, *, tm=None, tn=None, tk=None,
                  force_tiled=False, use_bf16=False):
    """Equivalent of Model.forward(x1, x2, inp): mm(x1, x2 + inp) + inp."""
    assert x1.shape == x2.shape == inp.shape
    n, m = x1.shape
    # Square inputs are required because `inp` is added both before the matmul
    # (as a [K, N] operand) and after it (as an [M, N] operand).
    assert n == m, "torch.mm with the shared `inp` add requires square inputs"

    x1 = x1.astype(jnp.float32)
    x2 = x2.astype(jnp.float32)
    inp = inp.astype(jnp.float32)

    if not force_tiled and n <= 1024:
        # Small/mid problems: single fully-VMEM-resident block (full-array
        # blocks are exempt from the (8,128) rule); avoids grid/pipeline
        # overhead and any padding.
        return _small_call(x1, x2, inp)

    # Equal tile sizes: ~8 MiB double-buffered VMEM at f32, lane-dense
    # (multiple-of-128) stores, i x j grid has >= 3x3 tiles above n=1024 so
    # both v7x TensorCores get work via the "parallel" axes.
    tm = 512 if tm is None else tm
    tn = 512 if tn is None else tn
    tk = 512 if tk is None else tk

    # Precompute b = x2 + inp once (one N^2 write + read) instead of streaming
    # both x2 and inp (k,j) panels from HBM once per i-tile.
    b = x2 + inp
    if use_bf16:
        # Optional MXU speedup; diverges from torch float32 mm numerics.
        x1 = x1.astype(jnp.bfloat16)
        b = b.astype(jnp.bfloat16)
    return _tiled_call(x1, b, inp, tm, tn, tk)


# ---------------------------------------------------------------------------
# Harness
# ---------------------------------------------------------------------------
if __name__ == "__main__":
    key = jax.random.PRNGKey(0)
    k1, k2, k3 = jax.random.split(key, 3)

    # Path 1: tiny problem (same shape class as the 3x3 reference module).
    N = 32
    x1 = jax.random.normal(k1, (N, N), dtype=jnp.float32)
    x2 = jax.random.normal(k2, (N, N), dtype=jnp.float32)
    inp = jax.random.normal(k3, (N, N), dtype=jnp.float32)

    out = jax.block_until_ready(model_forward(x1, x2, inp))
    ref = jnp.dot(x1, x2 + inp) + inp
    assert jnp.allclose(out, ref, atol=1e-4, rtol=1e-4), "small-path mismatch"

    # Path 2: exercise the tiled grid + out_ref-resident K accumulator
    # (still small and fast; forced onto the tiled path with 128 tiles).
    Nb = 256
    x1b = jax.random.normal(k1, (Nb, Nb), dtype=jnp.float32)
    x2b = jax.random.normal(k2, (Nb, Nb), dtype=jnp.float32)
    inpb = jax.random.normal(k3, (Nb, Nb), dtype=jnp.float32)

    outb = jax.block_until_ready(
        model_forward(x1b, x2b, inpb, tm=128, tn=128, tk=128, force_tiled=True)
    )
    refb = jnp.dot(x1b, x2b + inpb) + inpb
    assert jnp.allclose(outb, refb, atol=1e-3, rtol=1e-3), "tiled-path mismatch"

    print("KERNEL_OK")
</pallas_src>

<mosaic_0001>
module attributes {stable_mosaic.version = 11 : i64} {
  func.func @_mm_add_small_kernel(%arg0: memref<32x32xf32, #tpu.memory_space<vmem>>, %arg1: memref<32x32xf32, #tpu.memory_space<vmem>>, %arg2: memref<32x32xf32, #tpu.memory_space<vmem>>, %arg3: memref<32x32xf32, #tpu.memory_space<vmem>>) attributes {dimension_semantics = [], scalar_prefetch = 0 : i64, scratch_operands = 0 : i64, tpu.core_type = #tpu.core_type<tc>} {
    %c0 = arith.constant 0 : index
    %c0_0 = arith.constant 0 : index
    %0 = vector.load %arg1[%c0, %c0_0] : memref<32x32xf32, #tpu.memory_space<vmem>>, vector<32x32xf32>
    %c0_1 = arith.constant 0 : index
    %c0_2 = arith.constant 0 : index
    %1 = vector.load %arg2[%c0_1, %c0_2] : memref<32x32xf32, #tpu.memory_space<vmem>>, vector<32x32xf32>
    %2 = arith.addf %0, %1 : vector<32x32xf32>
    %c0_3 = arith.constant 0 : index
    %c0_4 = arith.constant 0 : index
    %3 = vector.load %arg0[%c0_3, %c0_4] : memref<32x32xf32, #tpu.memory_space<vmem>>, vector<32x32xf32>
    %cst = arith.constant dense<0.000000e+00> : vector<32x32xf32>
    %4 = tpu.matmul %3, %2, %cst {dimension_numbers = #tpu.dot_dimension_numbers<[1], [0], [0], [1], [0, 0, 1, 1], [], []>} : vector<32x32xf32>, vector<32x32xf32>, vector<32x32xf32> -> vector<32x32xf32>
    %c0_5 = arith.constant 0 : index
    %c0_6 = arith.constant 0 : index
    %5 = vector.load %arg2[%c0_5, %c0_6] : memref<32x32xf32, #tpu.memory_space<vmem>>, vector<32x32xf32>
    %6 = arith.addf %4, %5 : vector<32x32xf32>
    %c0_7 = arith.constant 0 : index
    %c0_8 = arith.constant 0 : index
    %7 = vector.load %arg3[%c0_7, %c0_8] : memref<32x32xf32, #tpu.memory_space<vmem>>, vector<32x32xf32>
    tpu.vector_store %arg3[%c0_7, %c0_8], %6 {strides = array<i32>} : memref<32x32xf32, #tpu.memory_space<vmem>>, vector<32x32xf32>,
    return
  }
}

</mosaic_0001>

<bundles_post_ra>
// kernel: tpu_custom_call.1
= control target key start
LH: loop header
LB: loop body
LE: loop exit
PB: predicated region body
PF: predicated region fallthrough
CT: control target
= control target key end

     0   :  { %8 = vsyncpa [#allocation3], 0  ;;  %s326_s0 = inlined_call_operand.hbm [shape: f32[32,32], index: 0, kind: input, shape index: {}]   ;;  %s327_s1 = inlined_call_operand.hbm [shape: f32[32,32], index: 1, kind: input, shape index: {}]   ;;  %s328_s2 = inlined_call_operand.hbm [shape: f32[32,32], index: 2, kind: input, shape index: {}]   ;;  %s329_s3 = inlined_call_operand.hbm [shape: f32[32,32], index: 3, kind: output, shape index: {}]  }
   0x1   :  { %9 = vsyncpa [#allocation6], 0 }
   0x2   :  { %10 = vsyncpa [#allocation4], 0  ;;  %s28_s14 = sshll.u32 %s327_s1, 4  ;;  %s268_s15 = smov [#allocation5]   ;;  %s29_s14 = int_to_ptr.hbm [resolvable:$true] %s28_s14 }
   0x3   :  { %s30_s16 = sshll.u32 %s268_s15, 4  ;;  %s15_s19 = sshll.u32 %s326_s0, 4  ;;  %s31_s16 = int_to_ptr.vmem [resolvable:$true] %s30_s16  ;;  %s16_s19 = int_to_ptr.hbm [resolvable:$true] %s15_s19 }
   0x4   :  { %s269_s20 = smov 128   ;;  %s270_s21 = smov 8  }
   0x5   :  { %36 = dma.hbm_to_vmem [thread:$0]  %s29_s14, 512, %s31_s16, [#allocation6], %s269_s20, %s269_s20, %s270_s21  }
   0x6   :  { %s271_s22 = smov [#allocation2]   ;;  %s41_s1 = sshll.u32 %s328_s2, 4  ;;  %s42_s1 = int_to_ptr.hbm [resolvable:$true] %s41_s1 }
   0x7   :  { %s17_s23 = sshll.u32 %s271_s22, 4  ;;  %s272_s0 = smov [#allocation7]   ;;  %s18_s23 = int_to_ptr.vmem [resolvable:$true] %s17_s23 }
   0x8   :  { %23 = dma.hbm_to_vmem [thread:$0]  %s16_s19, 512, %s18_s23, [#allocation3], %s269_s20, %s269_s20, %s270_s21  }
   0x9   :  { %s43_s26 = sshll.u32 %s272_s0, 4  ;;  %s44_s26 = int_to_ptr.vmem [resolvable:$true] %s43_s26 }
   0xa   :  { %49 = dma.hbm_to_vmem [thread:$0]  %s42_s1, 512, %s44_s26, [#allocation6], %s269_s20, %s269_s20, %s270_s21  }
   0xb   :  { %262 = dma.done.wait [#allocation3], 512  }
   0xc   :  { %263 = vsyncadd [#allocation3], 4294966784 }
   0xd   :  { %264 = dma.done.wait [#allocation6], 1024  }
   0xe   :  { %265 = vsyncadd [#allocation6], 4294966272  ;;  %v65_v0 = vld [vmem:[#allocation5 + $0x18] sm:$0xff]  ;;  %v64_v2 = vld [vmem:[#allocation5 + $0x10] sm:$0xff]  ;;  %vm78_vm0 = vcmask 261120   ;;  %s273_s2 = smov [#allocation8]  }
   0xf   :  { %v69_v1 = vld [vmem:[#allocation7 + $0x18] sm:$0xff]  ;;  %v68_v4 = vld [vmem:[#allocation7 + $0x10] sm:$0xff]  ;;  %v63_v5 = vld [vmem:[#allocation5 + $0x8] sm:$0xff]  ;;  %s128_s27 = sshll.u32 %s273_s2, 4  ;;  %s130_s30 = sshll.u32 %s329_s3, 4  ;;  %s129_s27 = int_to_ptr.vmem [resolvable:$true] %s128_s27  ;;  %s131_s30 = int_to_ptr.hbm [resolvable:$true] %s130_s30 }
  0x10   :  { %v73_v3 = vadd.f32 %v69_v1, %v65_v0  ;;  %v67_v6 = vld [vmem:[#allocation7 + $0x8] sm:$0xff]  ;;  %v72_v7 = vadd.f32 %v68_v4, %v64_v2  ;;  %v62_v8 = vld [vmem:[#allocation5] sm:$0xff]  ;;  %v76_v12 = vld [vmem:[#allocation2 + $0x10] sm:$0xff] }
  0x11   :  { %v66_v9 = vld [vmem:[#allocation7] sm:$0xff]  ;;  %v71_v10 = vadd.f32 %v67_v6, %v63_v5  ;;  %v77_v13 = vld [vmem:[#allocation2 + $0x18] sm:$0xff]  ;;  %v75_v15 = vld [vmem:[#allocation2 + $0x8] sm:$0xff] }
  0x12   :  { %149 = vmatpush.msra.mxu2 %v73_v3  ;;  %150 = vmatpush.msra.mxu3 %v73_v3  ;;  %v70_v11 = vadd.f32 %v66_v9, %v62_v8  ;;  %v74_v14 = vld [vmem:[#allocation2] sm:$0xff] }
  0x13   :  { %103 = vmatpush.msra.mxu0 %v73_v3  ;;  %148 = vmatpush.msra.mxu1 %v73_v3 }
  0x14   :  { %152 = vmatpush.msra.mxu2 %v72_v7  ;;  %153 = vmatpush.msra.mxu3 %v72_v7 }
  0x15   :  { %104 = vmatpush.msra.mxu0 %v72_v7  ;;  %151 = vmatpush.msra.mxu1 %v72_v7 }
  0x16   :  { %155 = vmatpush.msra.mxu2 %v71_v10  ;;  %156 = vmatpush.msra.mxu3 %v71_v10 }
  0x17   :  { %105 = vmatpush.msra.mxu0 %v71_v10  ;;  %154 = vmatpush.msra.mxu1 %v71_v10 }
  0x18   :  { %158 = vmatpush.msra.mxu2 %v70_v11  ;;  %159 = vmatpush.msra.mxu3 %v70_v11 }
  0x19   :  { %146 = vmatmul.msk.f32.vlgmr.msra.gmra.mxu2 %vm78_vm0, %v76_v12  ;;  %147 = vmatmul.msk.f32.vlgmr.msra.gmra.mxu3 %vm78_vm0, %v77_v13 }
  0x1a   :  { %106 = vmatpush.msra.mxu0 %v70_v11  ;;  %157 = vmatpush.msra.mxu1 %v70_v11 }
  0x1b   :  { %144 = vmatmul.msk.f32.vlgmr.msra.gmra.mxu0 %vm78_vm0, %v74_v14  ;;  %145 = vmatmul.msk.f32.vlgmr.msra.gmra.mxu1 %vm78_vm0, %v75_v15 }
  0x98   :  { %v108_v16 = vpop.f32.mrf.mxu0  ;;  %v111_v17 = vpop.f32.mrf.mxu1 }
  0x99   :  { %v109_v18 = vadd.f32 %v108_v16, %v66_v9  ;;  %v112_v19 = vadd.f32 %v111_v17, %v67_v6 }
  0x9b   :  { %120 = vst.msk [vmem:[#allocation8] sm:$0xff] %vm78_vm0, %v109_v18 }
  0x9c   :  { %121 = vst.msk [vmem:[#allocation8 + $0x8] sm:$0xff] %vm78_vm0, %v112_v19  ;;  %v114_v20 = vpop.f32.mrf.mxu2  ;;  %v117_v21 = vpop.f32.mrf.mxu3 }
  0x9d   :  { %v115_v22 = vadd.f32 %v114_v20, %v68_v4  ;;  %v118_v23 = vadd.f32 %v117_v21, %v69_v1 }
  0x9f   :  { %122 = vst.msk [vmem:[#allocation8 + $0x10] sm:$0xff] %vm78_vm0, %v115_v22 }
  0xa0   :  { %123 = vst.msk [vmem:[#allocation8 + $0x18] sm:$0xff] %vm78_vm0, %v118_v23 }
  0xa1   :  { %136 = dma.vmem_to_hbm [thread:$0]  %s129_s27, 512, %s131_s30, [#allocation4], %s269_s20, %s269_s20, %s270_s21  }
  0xa2   :  { %266 = dma.done.wait [#allocation4], 512  }
  0xa3   :  { %267 = vsyncadd [#allocation4], 4294966784 }
  0xa4   :  { %141 = vsyncpa [#allocation3], 1 }
  0xa5   :  { %142 = vsyncpa [#allocation6], 1 }
  0xa6   :  { %143 = vsyncpa [#allocation4], 1 }

</bundles_post_ra>
